<compile_context>
chip_gen: v6e
topology: v6e:2x2x1
jax: 0.10.0
libtpu: 0.0.40
codegen_flags: <defaults>
</compile_context>

<pallas_src>
import functools

import jax
import jax.numpy as jnp
import numpy as np
from jax.experimental import pallas as pl
from jax.experimental.pallas import tpu as pltpu


def _cross_stage_attention_kernel(x_ref, wqkv_ref, bqkv_ref, wp_ref, bp_ref,
                                  o_ref, *, num_heads):
    Bb, N, C = x_ref.shape
    D = C // num_heads
    out_dim = o_ref.shape[-1]

    # One big QKV matmul over all Bb*N rows (fills the MXU M dimension).
    xf = x_ref[...].reshape(Bb * N, C)                                   # (Bb*N, C)
    qkv = jnp.dot(xf, wqkv_ref[...],
                  preferred_element_type=jnp.float32) + bqkv_ref[...]    # (Bb*N, 3C)
    qkv = qkv.reshape(Bb, N, 3 * C)

    # Attention scale is already folded into the Q weight/bias in the wrapper.
    q = qkv[:, :, 0 * C:1 * C]                                           # (Bb, N, C)
    k = qkv[:, :, 1 * C:2 * C]
    v = qkv[:, :, 2 * C:3 * C]

    wp = wp_ref[...]                                                     # (C, out_dim)
    inv_n = 1.0 / N

    out = jnp.zeros((Bb, out_dim), jnp.float32)
    for h in range(num_heads):  # static unroll; each iteration is batched over Bb
        qh = q[:, :, h * D:(h + 1) * D]                                  # (Bb, N, D)
        kh = k[:, :, h * D:(h + 1) * D]
        vh = v[:, :, h * D:(h + 1) * D]

        s = jnp.einsum('bnd,bmd->bnm', qh, kh,
                       preferred_element_type=jnp.float32)               # (Bb, N, N)
        s = s - jnp.max(s, axis=-1, keepdims=True)
        p = jnp.exp(s)
        p = p * pl.reciprocal(jnp.sum(p, axis=-1, keepdims=True), approx=True)

        # mean over query rows commutes with P @ V: pool P first, then a tiny
        # weighted sum over keys -> never materialize the (N, D) head outputs.
        mbar = jnp.sum(p, axis=1) * inv_n                                # (Bb, N)
        pooled_h = jnp.sum(mbar[:, :, None] * vh, axis=1)                # (Bb, D)

        # Fold the 64-wide projection per head: out += pooled_h @ Wp_h.
        out = out + jnp.dot(pooled_h, wp[h * D:(h + 1) * D, :],
                            preferred_element_type=jnp.float32)          # (Bb, 64)

    o_ref[...] = (out + bp_ref[...]).astype(o_ref.dtype)


def cross_stage_attention(x_list, params, num_heads=4, block_b=None):
    x = jnp.concatenate(x_list, axis=1).astype(jnp.float32)              # (B, N, C)
    B, N, C = x.shape
    assert C % num_heads == 0
    scale = float((C // num_heads) ** (-0.5))

    # --- prepare weights (once, in the wrapper, outside the kernel) ---
    wqkv = params["wqkv"]                                                # (3C, C)
    bqkv = params["bqkv"]                                                # (3C,)
    # fold the attention scale into the Q projection rows
    wqkv_t = jnp.concatenate([wqkv[:C] * scale, wqkv[C:]], axis=0).T     # (C, 3C)
    bqkv_row = jnp.concatenate([bqkv[:C] * scale, bqkv[C:]]).reshape(1, 3 * C)
    wp_t = params["wp"].T                                                # (C, 64)
    bp_row = params["bp"].reshape(1, -1)                                 # (1, 64)
    out_dim = wp_t.shape[1]

    # --- choose batch-block: ~512 rows of (block_b*N) per QKV matmul; keep ---
    # --- block_b a multiple of 8 whenever the batch is split into blocks.  ---
    if block_b is None:
        cap = max(1, 512 // max(N, 1))
        if B <= cap:
            block_b = B                        # single block, no padding
        else:
            block_b = max(8, (cap // 8) * 8)   # multiple blocks -> multiple of 8
    num_blocks = pl.cdiv(B, block_b)
    B_pad = num_blocks * block_b
    if B_pad != B:
        x = jnp.pad(x, ((0, B_pad - B), (0, 0), (0, 0)))                 # masked tail

    kernel = functools.partial(_cross_stage_attention_kernel, num_heads=num_heads)

    out = pl.pallas_call(
        kernel,
        out_shape=jax.ShapeDtypeStruct((B_pad, out_dim), jnp.float32),
        grid_spec=pltpu.PrefetchScalarGridSpec(
            num_scalar_prefetch=0,
            grid=(num_blocks,),
            in_specs=[
                pl.BlockSpec((block_b, N, C), lambda b: (b, 0, 0)),
                pl.BlockSpec((C, 3 * C), lambda b: (0, 0)),
                pl.BlockSpec((1, 3 * C), lambda b: (0, 0)),
                pl.BlockSpec((C, out_dim), lambda b: (0, 0)),
                pl.BlockSpec((1, out_dim), lambda b: (0, 0)),
            ],
            out_specs=pl.BlockSpec((block_b, out_dim), lambda b: (b, 0)),
        ),
        compiler_params=pltpu.CompilerParams(
            dimension_semantics=("parallel",)),
    )(x, wqkv_t, bqkv_row, wp_t, bp_row)

    return out[:B]


def cross_stage_attention_ref(x_list, params, num_heads=4):
    """Pure-JAX reference mirroring the PyTorch forward, for validation."""
    x = jnp.concatenate(x_list, axis=1)
    B, N, C = x.shape
    D = C // num_heads
    qkv = x @ params["wqkv"].T + params["bqkv"]
    q, k, v = jnp.split(qkv, 3, axis=-1)
    to_heads = lambda t: t.reshape(B, N, num_heads, D).transpose(0, 2, 1, 3)
    q, k, v = to_heads(q), to_heads(k), to_heads(v)
    attn = jax.nn.softmax(
        jnp.einsum("bhnd,bhmd->bhnm", q, k) * (D ** (-0.5)), axis=-1)
    out = jnp.einsum("bhnm,bhmd->bhnd", attn, v).transpose(0, 2, 1, 3).reshape(B, N, C)
    return out.mean(axis=1) @ params["wp"].T + params["bp"]


if __name__ == "__main__":
    B, C, num_heads = 2, 32, 4
    seq1, seq2 = 8, 8

    key = jax.random.PRNGKey(0)
    k1, k2, k3, k4, k5, k6 = jax.random.split(key, 6)
    params = {
        "wqkv": jax.random.normal(k1, (3 * C, C), jnp.float32) * 0.02,   # nn.Linear(C, 3C).weight
        "bqkv": jax.random.normal(k2, (3 * C,), jnp.float32) * 0.02,     # nn.Linear(C, 3C).bias
        "wp":   jax.random.normal(k3, (64, C), jnp.float32) * 0.02,      # nn.Linear(C, 64).weight
        "bp":   jax.random.normal(k4, (64,), jnp.float32) * 0.02,        # nn.Linear(C, 64).bias
    }
    x_list = [
        jax.random.normal(k5, (B, seq1, C), jnp.float32),
        jax.random.normal(k6, (B, seq2, C), jnp.float32),
    ]

    out = cross_stage_attention(x_list, params, num_heads=num_heads)
    out = jax.block_until_ready(out)

    ref = cross_stage_attention_ref(x_list, params, num_heads=num_heads)
    np.testing.assert_allclose(np.asarray(out), np.asarray(ref), atol=1e-4, rtol=1e-4)

    print("KERNEL_OK")
</pallas_src>

<mosaic_0001>
module attributes {stable_mosaic.version = 11 : i64} {
  func.func @_cross_stage_attention_kernel(%arg0: i32, %arg1: memref<2x16x32xf32, #tpu.memory_space<vmem>>, %arg2: memref<32x96xf32, #tpu.memory_space<vmem>>, %arg3: memref<1x96xf32, #tpu.memory_space<vmem>>, %arg4: memref<32x64xf32, #tpu.memory_space<vmem>>, %arg5: memref<1x64xf32, #tpu.memory_space<vmem>>, %arg6: memref<2x64xf32, #tpu.memory_space<vmem>>) attributes {dimension_semantics = [#tpu.dimension_semantics<parallel>], iteration_bounds = array<i64: 1>, scalar_prefetch = 0 : i64, scratch_operands = 0 : i64, tpu.core_type = #tpu.core_type<tc>, window_params = [{transform_indices = @transform_0, window_bounds = array<i64: 2, 16, 32>}, {pipeline_mode = #tpu.pipeline_mode<synchronous>, transform_indices = @transform_1, window_bounds = array<i64: 32, 96>}, {pipeline_mode = #tpu.pipeline_mode<synchronous>, transform_indices = @transform_2, window_bounds = array<i64: 1, 96>}, {pipeline_mode = #tpu.pipeline_mode<synchronous>, transform_indices = @transform_3, window_bounds = array<i64: 32, 64>}, {pipeline_mode = #tpu.pipeline_mode<synchronous>, transform_indices = @transform_4, window_bounds = array<i64: 1, 64>}, {transform_indices = @transform_5, window_bounds = array<i64: 2, 64>}]} {
    %c0 = arith.constant 0 : index
    %c0_0 = arith.constant 0 : index
    %c0_1 = arith.constant 0 : index
    %0 = vector.load %arg1[%c0, %c0_0, %c0_1] : memref<2x16x32xf32, #tpu.memory_space<vmem>>, vector<2x16x32xf32>
    %1 = vector.shape_cast %0 : vector<2x16x32xf32> to vector<32x32xf32>
    %c0_2 = arith.constant 0 : index
    %c0_3 = arith.constant 0 : index
    %2 = vector.load %arg2[%c0_2, %c0_3] : memref<32x96xf32, #tpu.memory_space<vmem>>, vector<32x96xf32>
    %cst = arith.constant dense<0.000000e+00> : vector<32x96xf32>
    %3 = tpu.matmul %1, %2, %cst {dimension_numbers = #tpu.dot_dimension_numbers<[1], [0], [0], [1], [0, 0, 1, 1], [], []>} : vector<32x32xf32>, vector<32x96xf32>, vector<32x96xf32> -> vector<32x96xf32>
    %c0_4 = arith.constant 0 : index
    %c0_5 = arith.constant 0 : index
    %4 = vector.load %arg3[%c0_4, %c0_5] : memref<1x96xf32, #tpu.memory_space<vmem>>, vector<1x96xf32>
    %5 = vector.broadcast %4 : vector<1x96xf32> to vector<32x96xf32>
    %6 = arith.addf %3, %5 : vector<32x96xf32>
    %7 = vector.shape_cast %6 : vector<32x96xf32> to vector<2x16x96xf32>
    %8 = vector.extract_strided_slice %7 {offsets = [0, 0, 0], sizes = [2, 16, 32], strides = [1, 1, 1]} : vector<2x16x96xf32> to vector<2x16x32xf32>
    %9 = vector.extract_strided_slice %7 {offsets = [0, 0, 32], sizes = [2, 16, 32], strides = [1, 1, 1]} : vector<2x16x96xf32> to vector<2x16x32xf32>
    %10 = vector.extract_strided_slice %7 {offsets = [0, 0, 64], sizes = [2, 16, 32], strides = [1, 1, 1]} : vector<2x16x96xf32> to vector<2x16x32xf32>
    %c0_6 = arith.constant 0 : index
    %c0_7 = arith.constant 0 : index
    %11 = vector.load %arg4[%c0_6, %c0_7] : memref<32x64xf32, #tpu.memory_space<vmem>>, vector<32x64xf32>
    %cst_8 = arith.constant 0.000000e+00 : f32
    %12 = vector.broadcast %cst_8 : f32 to vector<2x64xf32>
    %13 = vector.extract_strided_slice %8 {offsets = [0, 0, 0], sizes = [2, 16, 8], strides = [1, 1, 1]} : vector<2x16x32xf32> to vector<2x16x8xf32>
    %14 = vector.extract_strided_slice %9 {offsets = [0, 0, 0], sizes = [2, 16, 8], strides = [1, 1, 1]} : vector<2x16x32xf32> to vector<2x16x8xf32>
    %15 = vector.extract_strided_slice %10 {offsets = [0, 0, 0], sizes = [2, 16, 8], strides = [1, 1, 1]} : vector<2x16x32xf32> to vector<2x16x8xf32>
    "tpu.trace_start"() <{level = 10 : i32, message = "bnd,bmd->bnm"}> : () -> ()
    %cst_9 = arith.constant dense<0.000000e+00> : vector<2x16x16xf32>
    %16 = tpu.matmul %13, %14, %cst_9 {dimension_numbers = #tpu.dot_dimension_numbers<[2], [2], [1], [1], [0, 0, 0, 1, 1, 1], [0], [0]>} : vector<2x16x8xf32>, vector<2x16x8xf32>, vector<2x16x16xf32> -> vector<2x16x16xf32>
    "tpu.trace_stop"() : () -> ()
    %cst_10 = arith.constant dense<0xFF800000> : vector<2x16xf32>
    %17 = vector.multi_reduction <maximumf>, %16, %cst_10 [2] : vector<2x16x16xf32> to vector<2x16xf32>
    %18 = vector.shape_cast %17 : vector<2x16xf32> to vector<2x16x1xf32>
    %19 = vector.broadcast %18 : vector<2x16x1xf32> to vector<2x16x16xf32>
    %20 = arith.subf %16, %19 : vector<2x16x16xf32>
    %21 = math.exp %20 : vector<2x16x16xf32>
    %cst_11 = arith.constant dense<0.000000e+00> : vector<2x16xf32>
    %22 = vector.multi_reduction <add>, %21, %cst_11 [2] : vector<2x16x16xf32> to vector<2x16xf32>
    %23 = vector.shape_cast %22 : vector<2x16xf32> to vector<2x16x1xf32>
    %24 = tpu.reciprocal %23 {approx = true} : vector<2x16x1xf32> -> vector<2x16x1xf32>
    %25 = vector.broadcast %24 : vector<2x16x1xf32> to vector<2x16x16xf32>
    %26 = arith.mulf %21, %25 : vector<2x16x16xf32>
    %cst_12 = arith.constant dense<0.000000e+00> : vector<2x16xf32>
    %27 = vector.multi_reduction <add>, %26, %cst_12 [1] : vector<2x16x16xf32> to vector<2x16xf32>
    %cst_13 = arith.constant 6.250000e-02 : f32
    %28 = vector.broadcast %cst_13 : f32 to vector<2x16xf32>
    %29 = arith.mulf %27, %28 : vector<2x16xf32>
    %30 = vector.shape_cast %29 : vector<2x16xf32> to vector<2x16x1xf32>
    %31 = vector.broadcast %30 : vector<2x16x1xf32> to vector<2x16x8xf32>
    %32 = arith.mulf %31, %15 : vector<2x16x8xf32>
    %cst_14 = arith.constant dense<0.000000e+00> : vector<2x8xf32>
    %33 = vector.multi_reduction <add>, %32, %cst_14 [1] : vector<2x16x8xf32> to vector<2x8xf32>
    %34 = vector.extract_strided_slice %11 {offsets = [0, 0], sizes = [8, 64], strides = [1, 1]} : vector<32x64xf32> to vector<8x64xf32>
    %cst_15 = arith.constant dense<0.000000e+00> : vector<2x64xf32>
    %35 = tpu.matmul %33, %34, %cst_15 {dimension_numbers = #tpu.dot_dimension_numbers<[1], [0], [0], [1], [0, 0, 1, 1], [], []>} : vector<2x8xf32>, vector<8x64xf32>, vector<2x64xf32> -> vector<2x64xf32>
    %36 = arith.addf %12, %35 : vector<2x64xf32>
    %37 = vector.extract_strided_slice %8 {offsets = [0, 0, 8], sizes = [2, 16, 8], strides = [1, 1, 1]} : vector<2x16x32xf32> to vector<2x16x8xf32>
    %38 = vector.extract_strided_slice %9 {offsets = [0, 0, 8], sizes = [2, 16, 8], strides = [1, 1, 1]} : vector<2x16x32xf32> to vector<2x16x8xf32>
    %39 = vector.extract_strided_slice %10 {offsets = [0, 0, 8], sizes = [2, 16, 8], strides = [1, 1, 1]} : vector<2x16x32xf32> to vector<2x16x8xf32>
    "tpu.trace_start"() <{level = 10 : i32, message = "bnd,bmd->bnm"}> : () -> ()
    %cst_16 = arith.constant dense<0.000000e+00> : vector<2x16x16xf32>
    %40 = tpu.matmul %37, %38, %cst_16 {dimension_numbers = #tpu.dot_dimension_numbers<[2], [2], [1], [1], [0, 0, 0, 1, 1, 1], [0], [0]>} : vector<2x16x8xf32>, vector<2x16x8xf32>, vector<2x16x16xf32> -> vector<2x16x16xf32>
    "tpu.trace_stop"() : () -> ()
    %cst_17 = arith.constant dense<0xFF800000> : vector<2x16xf32>
    %41 = vector.multi_reduction <maximumf>, %40, %cst_17 [2] : vector<2x16x16xf32> to vector<2x16xf32>
    %42 = vector.shape_cast %41 : vector<2x16xf32> to vector<2x16x1xf32>
    %43 = vector.broadcast %42 : vector<2x16x1xf32> to vector<2x16x16xf32>
    %44 = arith.subf %40, %43 : vector<2x16x16xf32>
    %45 = math.exp %44 : vector<2x16x16xf32>
    %cst_18 = arith.constant dense<0.000000e+00> : vector<2x16xf32>
    %46 = vector.multi_reduction <add>, %45, %cst_18 [2] : vector<2x16x16xf32> to vector<2x16xf32>
    %47 = vector.shape_cast %46 : vector<2x16xf32> to vector<2x16x1xf32>
    %48 = tpu.reciprocal %47 {approx = true} : vector<2x16x1xf32> -> vector<2x16x1xf32>
    %49 = vector.broadcast %48 : vector<2x16x1xf32> to vector<2x16x16xf32>
    %50 = arith.mulf %45, %49 : vector<2x16x16xf32>
    %cst_19 = arith.constant dense<0.000000e+00> : vector<2x16xf32>
    %51 = vector.multi_reduction <add>, %50, %cst_19 [1] : vector<2x16x16xf32> to vector<2x16xf32>
    %cst_20 = arith.constant 6.250000e-02 : f32
    %52 = vector.broadcast %cst_20 : f32 to vector<2x16xf32>
    %53 = arith.mulf %51, %52 : vector<2x16xf32>
    %54 = vector.shape_cast %53 : vector<2x16xf32> to vector<2x16x1xf32>
    %55 = vector.broadcast %54 : vector<2x16x1xf32> to vector<2x16x8xf32>
    %56 = arith.mulf %55, %39 : vector<2x16x8xf32>
    %cst_21 = arith.constant dense<0.000000e+00> : vector<2x8xf32>
    %57 = vector.multi_reduction <add>, %56, %cst_21 [1] : vector<2x16x8xf32> to vector<2x8xf32>
    %58 = vector.extract_strided_slice %11 {offsets = [8, 0], sizes = [8, 64], strides = [1, 1]} : vector<32x64xf32> to vector<8x64xf32>
    %cst_22 = arith.constant dense<0.000000e+00> : vector<2x64xf32>
    %59 = tpu.matmul %57, %58, %cst_22 {dimension_numbers = #tpu.dot_dimension_numbers<[1], [0], [0], [1], [0, 0, 1, 1], [], []>} : vector<2x8xf32>, vector<8x64xf32>, vector<2x64xf32> -> vector<2x64xf32>
    %60 = arith.addf %36, %59 : vector<2x64xf32>
    %61 = vector.extract_strided_slice %8 {offsets = [0, 0, 16], sizes = [2, 16, 8], strides = [1, 1, 1]} : vector<2x16x32xf32> to vector<2x16x8xf32>
    %62 = vector.extract_strided_slice %9 {offsets = [0, 0, 16], sizes = [2, 16, 8], strides = [1, 1, 1]} : vector<2x16x32xf32> to vector<2x16x8xf32>
    %63 = vector.extract_strided_slice %10 {offsets = [0, 0, 16], sizes = [2, 16, 8], strides = [1, 1, 1]} : vector<2x16x32xf32> to vector<2x16x8xf32>
    "tpu.trace_start"() <{level = 10 : i32, message = "bnd,bmd->bnm"}> : () -> ()
    %cst_23 = arith.constant dense<0.000000e+00> : vector<2x16x16xf32>
    %64 = tpu.matmul %61, %62, %cst_23 {dimension_numbers = #tpu.dot_dimension_numbers<[2], [2], [1], [1], [0, 0, 0, 1, 1, 1], [0], [0]>} : vector<2x16x8xf32>, vector<2x16x8xf32>, vector<2x16x16xf32> -> vector<2x16x16xf32>
    "tpu.trace_stop"() : () -> ()
    %cst_24 = arith.constant dense<0xFF800000> : vector<2x16xf32>
    %65 = vector.multi_reduction <maximumf>, %64, %cst_24 [2] : vector<2x16x16xf32> to vector<2x16xf32>
    %66 = vector.shape_cast %65 : vector<2x16xf32> to vector<2x16x1xf32>
    %67 = vector.broadcast %66 : vector<2x16x1xf32> to vector<2x16x16xf32>
    %68 = arith.subf %64, %67 : vector<2x16x16xf32>
    %69 = math.exp %68 : vector<2x16x16xf32>
    %cst_25 = arith.constant dense<0.000000e+00> : vector<2x16xf32>
    %70 = vector.multi_reduction <add>, %69, %cst_25 [2] : vector<2x16x16xf32> to vector<2x16xf32>
    %71 = vector.shape_cast %70 : vector<2x16xf32> to vector<2x16x1xf32>
    %72 = tpu.reciprocal %71 {approx = true} : vector<2x16x1xf32> -> vector<2x16x1xf32>
    %73 = vector.broadcast %72 : vector<2x16x1xf32> to vector<2x16x16xf32>
    %74 = arith.mulf %69, %73 : vector<2x16x16xf32>
    %cst_26 = arith.constant dense<0.000000e+00> : vector<2x16xf32>
    %75 = vector.multi_reduction <add>, %74, %cst_26 [1] : vector<2x16x16xf32> to vector<2x16xf32>
    %cst_27 = arith.constant 6.250000e-02 : f32
    %76 = vector.broadcast %cst_27 : f32 to vector<2x16xf32>
    %77 = arith.mulf %75, %76 : vector<2x16xf32>
    %78 = vector.shape_cast %77 : vector<2x16xf32> to vector<2x16x1xf32>
    %79 = vector.broadcast %78 : vector<2x16x1xf32> to vector<2x16x8xf32>
    %80 = arith.mulf %79, %63 : vector<2x16x8xf32>
    %cst_28 = arith.constant dense<0.000000e+00> : vector<2x8xf32>
    %81 = vector.multi_reduction <add>, %80, %cst_28 [1] : vector<2x16x8xf32> to vector<2x8xf32>
    %82 = vector.extract_strided_slice %11 {offsets = [16, 0], sizes = [8, 64], strides = [1, 1]} : vector<32x64xf32> to vector<8x64xf32>
    %cst_29 = arith.constant dense<0.000000e+00> : vector<2x64xf32>
    %83 = tpu.matmul %81, %82, %cst_29 {dimension_numbers = #tpu.dot_dimension_numbers<[1], [0], [0], [1], [0, 0, 1, 1], [], []>} : vector<2x8xf32>, vector<8x64xf32>, vector<2x64xf32> -> vector<2x64xf32>
    %84 = arith.addf %60, %83 : vector<2x64xf32>
    %85 = vector.extract_strided_slice %8 {offsets = [0, 0, 24], sizes = [2, 16, 8], strides = [1, 1, 1]} : vector<2x16x32xf32> to vector<2x16x8xf32>
    %86 = vector.extract_strided_slice %9 {offsets = [0, 0, 24], sizes = [2, 16, 8], strides = [1, 1, 1]} : vector<2x16x32xf32> to vector<2x16x8xf32>
    %87 = vector.extract_strided_slice %10 {offsets = [0, 0, 24], sizes = [2, 16, 8], strides = [1, 1, 1]} : vector<2x16x32xf32> to vector<2x16x8xf32>
    "tpu.trace_start"() <{level = 10 : i32, message = "bnd,bmd->bnm"}> : () -> ()
    %cst_30 = arith.constant dense<0.000000e+00> : vector<2x16x16xf32>
    %88 = tpu.matmul %85, %86, %cst_30 {dimension_numbers = #tpu.dot_dimension_numbers<[2], [2], [1], [1], [0, 0, 0, 1, 1, 1], [0], [0]>} : vector<2x16x8xf32>, vector<2x16x8xf32>, vector<2x16x16xf32> -> vector<2x16x16xf32>
    "tpu.trace_stop"() : () -> ()
    %cst_31 = arith.constant dense<0xFF800000> : vector<2x16xf32>
    %89 = vector.multi_reduction <maximumf>, %88, %cst_31 [2] : vector<2x16x16xf32> to vector<2x16xf32>
    %90 = vector.shape_cast %89 : vector<2x16xf32> to vector<2x16x1xf32>
    %91 = vector.broadcast %90 : vector<2x16x1xf32> to vector<2x16x16xf32>
    %92 = arith.subf %88, %91 : vector<2x16x16xf32>
    %93 = math.exp %92 : vector<2x16x16xf32>
    %cst_32 = arith.constant dense<0.000000e+00> : vector<2x16xf32>
    %94 = vector.multi_reduction <add>, %93, %cst_32 [2] : vector<2x16x16xf32> to vector<2x16xf32>
    %95 = vector.shape_cast %94 : vector<2x16xf32> to vector<2x16x1xf32>
    %96 = tpu.reciprocal %95 {approx = true} : vector<2x16x1xf32> -> vector<2x16x1xf32>
    %97 = vector.broadcast %96 : vector<2x16x1xf32> to vector<2x16x16xf32>
    %98 = arith.mulf %93, %97 : vector<2x16x16xf32>
    %cst_33 = arith.constant dense<0.000000e+00> : vector<2x16xf32>
    %99 = vector.multi_reduction <add>, %98, %cst_33 [1] : vector<2x16x16xf32> to vector<2x16xf32>
    %cst_34 = arith.constant 6.250000e-02 : f32
    %100 = vector.broadcast %cst_34 : f32 to vector<2x16xf32>
    %101 = arith.mulf %99, %100 : vector<2x16xf32>
    %102 = vector.shape_cast %101 : vector<2x16xf32> to vector<2x16x1xf32>
    %103 = vector.broadcast %102 : vector<2x16x1xf32> to vector<2x16x8xf32>
    %104 = arith.mulf %103, %87 : vector<2x16x8xf32>
    %cst_35 = arith.constant dense<0.000000e+00> : vector<2x8xf32>
    %105 = vector.multi_reduction <add>, %104, %cst_35 [1] : vector<2x16x8xf32> to vector<2x8xf32>
    %106 = vector.extract_strided_slice %11 {offsets = [24, 0], sizes = [8, 64], strides = [1, 1]} : vector<32x64xf32> to vector<8x64xf32>
    %cst_36 = arith.constant dense<0.000000e+00> : vector<2x64xf32>
    %107 = tpu.matmul %105, %106, %cst_36 {dimension_numbers = #tpu.dot_dimension_numbers<[1], [0], [0], [1], [0, 0, 1, 1], [], []>} : vector<2x8xf32>, vector<8x64xf32>, vector<2x64xf32> -> vector<2x64xf32>
    %108 = arith.addf %84, %107 : vector<2x64xf32>
    %c0_37 = arith.constant 0 : index
    %c0_38 = arith.constant 0 : index
    %109 = vector.load %arg5[%c0_37, %c0_38] : memref<1x64xf32, #tpu.memory_space<vmem>>, vector<1x64xf32>
    %110 = vector.broadcast %109 : vector<1x64xf32> to vector<2x64xf32>
    %111 = arith.addf %108, %110 : vector<2x64xf32>
    %c0_39 = arith.constant 0 : index
    %c0_40 = arith.constant 0 : index
    %112 = vector.load %arg6[%c0_39, %c0_40] : memref<2x64xf32, #tpu.memory_space<vmem>>, vector<2x64xf32>
    tpu.vector_store %arg6[%c0_39, %c0_40], %111 {strides = array<i32>} : memref<2x64xf32, #tpu.memory_space<vmem>>, vector<2x64xf32>,
    return
  }
  func.func @transform_0(%arg0: i32) -> (i32, i32, i32) {
    %c0_i32 = arith.constant 0 : i32
    %c0_i32_0 = arith.constant 0 : i32
    %c0_i32_1 = arith.constant 0 : i32
    return %arg0, %c0_i32, %c0_i32_0 : i32, i32, i32
  }
  func.func @transform_1(%arg0: i32) -> (i32, i32) {
    %c0_i32 = arith.constant 0 : i32
    %c0_i32_0 = arith.constant 0 : i32
    %c0_i32_1 = arith.constant 0 : i32
    return %c0_i32, %c0_i32_0 : i32, i32
  }
  func.func @transform_2(%arg0: i32) -> (i32, i32) {
    %c0_i32 = arith.constant 0 : i32
    %c0_i32_0 = arith.constant 0 : i32
    %c0_i32_1 = arith.constant 0 : i32
    return %c0_i32, %c0_i32_0 : i32, i32
  }
  func.func @transform_3(%arg0: i32) -> (i32, i32) {
    %c0_i32 = arith.constant 0 : i32
    %c0_i32_0 = arith.constant 0 : i32
    %c0_i32_1 = arith.constant 0 : i32
    return %c0_i32, %c0_i32_0 : i32, i32
  }
  func.func @transform_4(%arg0: i32) -> (i32, i32) {
    %c0_i32 = arith.constant 0 : i32
    %c0_i32_0 = arith.constant 0 : i32
    %c0_i32_1 = arith.constant 0 : i32
    return %c0_i32, %c0_i32_0 : i32, i32
  }
  func.func @transform_5(%arg0: i32) -> (i32, i32) {
    %c0_i32 = arith.constant 0 : i32
    %c0_i32_0 = arith.constant 0 : i32
    return %arg0, %c0_i32 : i32, i32
  }
}

</mosaic_0001>

<bundles_post_ra>
// kernel: tpu_custom_call.1
= control target key start
LH: loop header
LB: loop body
LE: loop exit
PB: predicated region body
PF: predicated region fallthrough
CT: control target
= control target key end

     0   :  { %10 = vsyncpa [#allocation3], 0  ;;  %s2264_s0 = inlined_call_operand.hbm [shape: f32[2,16,32], index: 0, kind: input, shape index: {}]   ;;  %s2265_s1 = inlined_call_operand.hbm [shape: f32[32,96], index: 1, kind: input, shape index: {}]   ;;  %s2266_s2 = inlined_call_operand.vmem [shape: f32[1,96], index: 2, kind: input, shape index: {}]   ;;  %s2267_s3 = inlined_call_operand.hbm [shape: f32[32,64], index: 3, kind: input, shape index: {}]   ;;  %s2268_s4 = inlined_call_operand.vmem [shape: f32[1,64], index: 4, kind: input, shape index: {}]   ;;  %s2269_s5 = inlined_call_operand.hbm [shape: f32[2,64], index: 5, kind: output, shape index: {}]  }
   0x1   :  { %11 = vsyncpa [#allocation6], 0 }
   0x2   :  { %12 = vsyncpa [#allocation4], 0  ;;  %s1995_s18 = smov [#allocation5]   ;;  %s1996_s20 = smov [#allocation2]  }
   0x3   :  { %s30_s19 = sshll.u32 %s1995_s18, 4  ;;  %s18_s21 = sshll.u32 %s1996_s20, 4  ;;  %s31_s19 = int_to_ptr.vmem [resolvable:$true] %s30_s19  ;;  %s19_s21 = int_to_ptr.vmem [resolvable:$true] %s18_s21 }
   0x4   :  { %s1917_s22 = scalar_lea.vmem %s31_s19, 512  ;;  %p1922_p1 = scmp.lt.s32.totalorder %s31_s19, %s31_s19 }
   0x5   :  { %p1918_p0 = scmp.ne.s32.totalorder %s31_s19, %s1917_s22  ;;  %p1923_p2 = scmp.lt.s32.totalorder %s1917_s22, %s1917_s22 }
   0x7   :  { %p1924_p3 = por %p1923_p2, %p1922_p1 }
   0x9   :  { %p1925_p4 = pnand %p1924_p3, %p1918_p0 }
   0xb   :  { %1928 = shalt.err (!%p1925_p4)
}
   0xc   :  { %s1997_s23 = smov 128   ;;  %s1998_s24 = smov 8  }
   0xd   :  { %36 = dma.hbm_to_vmem [thread:$0]  %s2265_s1, 512, %s31_s19, [#allocation6], %s1997_s23, %s1997_s23, %s1998_s24  }
   0xe   :  { %s1937_s27 = scalar_lea.vmem %s19_s21, 512  ;;  %p1942_p6 = scmp.lt.s32.totalorder %s19_s21, %s19_s21 }
   0xf   :  { %p1938_p5 = scmp.ne.s32.totalorder %s19_s21, %s1937_s27  ;;  %p1943_p7 = scmp.lt.s32.totalorder %s1937_s27, %s1937_s27 }
  0x11   :  { %p1944_p8 = por %p1943_p7, %p1942_p6 }
  0x13   :  { %p1945_p9 = pnand %p1944_p8, %p1938_p5 }
  0x15   :  { %1948 = shalt.err (!%p1945_p9)
}
  0x16   :  { %24 = dma.hbm_to_vmem [thread:$0]  %s2264_s0, 512, %s19_s21, [#allocation3], %s1997_s23, %s1997_s23, %s1998_s24  }
  0x17   :  { %s1999_s30 = smov [#allocation7]  }
  0x18   :  { %s44_s6 = sshll.u32 %s1999_s30, 4  ;;  %s45_s6 = int_to_ptr.vmem [resolvable:$true] %s44_s6 }
  0x19   :  { %s1957_s7 = scalar_lea.vmem %s45_s6, 512  ;;  %p1962_p11 = scmp.lt.s32.totalorder %s45_s6, %s45_s6 }
  0x1a   :  { %p1958_p10 = scmp.ne.s32.totalorder %s45_s6, %s1957_s7  ;;  %p1963_p12 = scmp.lt.s32.totalorder %s1957_s7, %s1957_s7 }
  0x1c   :  { %p1964_p13 = por %p1963_p12, %p1962_p11 }
  0x1e   :  { %p1965_p0 = pnand %p1964_p13, %p1958_p10 }
  0x20   :  { %1968 = shalt.err (!%p1965_p0)
}
  0x21   :  { %50 = dma.hbm_to_vmem [thread:$0]  %s2267_s3, 512, %s45_s6, [#allocation6], %s1997_s23, %s1997_s23, %s1998_s24  }
  0x22   :  { %1989 = dma.done.wait [#allocation3], 512  }
  0x23   :  { %1990 = vsyncadd [#allocation3], 4294966784 }
  0x24   :  { %1991 = dma.done.wait [#allocation6], 1024  }
  0x25   :  { %1992 = vsyncadd [#allocation6], 4294966272  ;;  %vm77_vm0 = vcmask 261120   ;;  %v69_v0 = vld [vmem:[#allocation5 + $0x18] sm:$0xff]  ;;  %v68_v1 = vld [vmem:[#allocation5 + $0x10] sm:$0xff]  ;;  %vm185_vm1 = vcmask 64512  }
  0x26   :  { %1736 = vmatprep.subr.mxu0 %v69_v0  ;;  %v62_v2 = vld [vmem:[#allocation2] sm:$0xff]  ;;  %v67_v3 = vld [vmem:[#allocation5 + $0x8] sm:$0xff]  ;;  %v64_v6 = vld [vmem:[#allocation2 + $0x10] sm:$0xff]  ;;  %s2000_s9 = smov 96   ;;  %s2002_s10 = smov 120   ;;  %vm358_vm2 = vcmask 130048  }
  0x27   :  { %1737 = vmatpush3.msra.mxu0 %v69_v0  ;;  %1744 = vmatprep.mubr.msk.f32.mxu0 %vm77_vm0, %v62_v2  ;;  %v66_v4 = vld [vmem:[#allocation5] sm:$0xff]  ;;  %v63_v5 = vld [vmem:[#allocation2 + $0x8] sm:$0xff]  ;;  %v65_v7 = vld [vmem:[#allocation2 + $0x18] sm:$0xff]  ;;  %s2003_s11 = smov 80   ;;  %vm2005_vm3 = vmmov 0   ;;  %vm724_vm4 = vcmask 654912  }
  0x28   :  { %1738 = vmatprep.subr.mxu0 %v68_v1  ;;  %v1646_v8 = vld [vmem:[%s2266_s2] ss:$0 sm:$0xff]  ;;  %s2001_s2 = smov 88   ;;  %vm441_vm5 = vcmask 589312   ;;  %vm745_vm6 = vcmask 1041409   ;;  %s2006_s12 = smov 56  }
  0x29   :  { %1739 = vmatpush3.msra.mxu0 %v68_v1  ;;  %s2007_s13 = smov 64   ;;  %s2008_s14 = smov 112   ;;  %vm1162_vm7 = vcmask 720512   ;;  %vm1523_vm8 = vcmask 786112   ;;  %vm1628_vm9 = vcmask 517120  }
  0x2a   :  { %1740 = vmatprep.subr.mxu0 %v67_v3  ;;  %s2009_s15 = smov 72   ;;  %s2010_s16 = smov 104  }
  0x2b   :  { %1741 = vmatpush3.msra.mxu0 %v67_v3  ;;  %s2011_s17 = smov 48   ;;  %s2012_s18 = smov 40  }
  0x2c   :  { %1742 = vmatprep.subr.mxu0 %v66_v4  ;;  %s2013_s21 = smov [#allocation8]  }
  0x2d   :  { %1743 = vmatpush3.msra.mxu0 %v66_v4  ;;  %s1636_s22 = sshll.u32 %s2013_s21, 4  ;;  %s1637_s22 = int_to_ptr.vmem [resolvable:$true] %s1636_s22 }
  0x2e   :  { %1745 = vmatmul.mubr.msk.f32.vlgmr.msra.gmra.mxu0 %vm77_vm0, %v63_v5  ;;  %s1969_s23 = scalar_lea.vmem %s1637_s22, 32  ;;  %p1974_p2 = scmp.lt.s32.totalorder %s1637_s22, %s1637_s22 }
  0x2f   :  { %1747 = vmatprep.mubr.msk.f32.mxu0 %vm77_vm0, %v64_v6  ;;  %p1970_p1 = scmp.ne.s32.totalorder %s1637_s22, %s1969_s23  ;;  %p1975_p3 = scmp.lt.s32.totalorder %s1969_s23, %s1969_s23 }
  0x31   :  { %p1976_p4 = por %p1975_p3, %p1974_p2 }
  0x32   :  { %1748 = vmatmul.mubr.msk.f32.gmra.mxu0 %vm77_vm0, %v65_v7 }
  0x33   :  { %p1977_p5 = pnand %p1976_p4, %p1970_p1 }
  0xee   :  { %v1746_v9 = vpop.f32.mrf.mxu0 }
  0xef   :  { %v2060_v10 = vadd.f32 %v1746_v9, %v1646_v8 }
  0xf0   :  { %v156_v11 = vpop.f32.mrf.mxu0 }
  0xf1   :  { %v2062_v12 = vadd.f32 %v1646_v8, %v156_v11  ;;  %183 = vrot.lane.b32.xlu0 %v2060_v10, %s2000_s9 }
  0xf2   :  { %v1749_v13 = vpop.f32.mrf.mxu0 }
  0xf3   :  { %v2065_v14 = vadd.f32 %v1749_v13, %v1646_v8  ;;  %181 = vrot.lane.b32.xlu1 %v2062_v12, %s2000_s9  ;;  %1754 = vmatprep.mubr.msk.f32.mxu1 %vm185_vm1, %v2062_v12 }
  0xf4   :  { %v166_v15 = vpop.f32.mrf.mxu0 }
  0xf5   :  { %v2070_v16 = vadd.f32 %v1646_v8, %v166_v15  ;;  %273 = vrot.lane.b32.xlu0 %v2065_v14, %s2000_s9 }
  0xf7   :  { %1761 = vmatprep.mubr.msk.f32.mxu0 %vm185_vm1, %v2070_v16  ;;  %557 = vrot.lane.b32.xlu1 %v2065_v14, %s2001_s2 }
  0xf9   :  { %466 = vrot.lane.b32.xlu0 %v2060_v10, %s2001_s2 }
  0xfb   :  { %271 = vrot.lane.b32.xlu1 %v2070_v16, %s2000_s9 }
  0xfd   :  { %464 = vrot.lane.b32.xlu0 %v2062_v12, %s2001_s2 }
  0xff   :  { %555 = vrot.lane.b32.xlu1 %v2070_v16, %s2001_s2 }
 0x101   :  { %460 = vrot.lane.b32.xlu0 %v2062_v12, %s2002_s10 }
 0x103   :  { %551 = vrot.lane.b32.xlu1 %v2070_v16, %s2002_s10 }
 0x105   :  { %462 = vrot.lane.b32.xlu0 %v2060_v10, %s2002_s10 }
 0x107   :  { %553 = vrot.lane.b32.xlu1 %v2065_v14, %s2002_s10 }
 0x163   :  { %v184_v17 = vpop.permute.xlu0 %183 }
 0x164   :  { %1750 = vmatprep.subr.msk.mxu1 %vm185_vm1, %v184_v17 }
 0x165   :  { %1751 = vmatpush3.xpose.msk.msra.mxu1 %vm185_vm1, %v184_v17  ;;  %v182_v18 = vpop.permute.xlu1 %181 }
 0x166   :  { %1752 = vmatprep.subr.msk.mxu1 %vm185_vm1, %v182_v18 }
 0x167   :  { %v274_v19 = vpop.permute.xlu0 %273 }
 0x168   :  { %1757 = vmatprep.subr.msk.mxu0 %vm185_vm1, %v274_v19 }
 0x169   :  { %1753 = vmatpush3.xpose.msk.msra.mxu1 %vm185_vm1, %v182_v18  ;;  %1758 = vmatpush3.xpose.msk.msra.mxu0 %vm185_vm1, %v274_v19  ;;  %v558_v20 = vpop.permute.xlu1 %557 }
 0x16b   :  { %v467_v21 = vpop.permute.xlu0 %466 }
 0x16c   :  { %1755 = vmatmul.mubr.msk.f32.vlgmr.msra.gmra.mxu1 %vm185_vm1, %v2060_v10  ;;  %1764 = vmatprep.subr.msk.mxu1 %vm185_vm1, %v467_v21 }
 0x16d   :  { %v272_v22 = vpop.permute.xlu1 %271  ;;  %1765 = vmatpush3.xpose.msk.msra.mxu1 %vm185_vm1, %v467_v21 }
 0x16e   :  { %1759 = vmatprep.subr.msk.mxu0 %vm185_vm1, %v272_v22 }
 0x16f   :  { %v465_v23 = vpop.permute.xlu0 %464  ;;  %1760 = vmatpush3.xpose.msk.msra.mxu0 %vm185_vm1, %v272_v22 }
 0x170   :  { %1766 = vmatprep.subr.msk.mxu1 %vm185_vm1, %v465_v23  ;;  %1771 = vmatprep.subr.msk.mxu0 %vm185_vm1, %v558_v20 }
 0x171   :  { %v556_v24 = vpop.permute.xlu1 %555  ;;  %1767 = vmatpush3.xpose.msk.msra.mxu1 %vm185_vm1, %v465_v23 }
 0x172   :  { %1762 = vmatmul.mubr.msk.f32.vlgmr.msra.gmra.mxu0 %vm185_vm1, %v2065_v14 }
 0x173   :  { %v461_v25 = vpop.permute.xlu0 %460  ;;  %1772 = vmatpush3.xpose.msk.msra.mxu0 %vm185_vm1, %v558_v20 }
 0x174   :  { %1768 = vmatprep.mubr.msk.f32.mxu1 %vm185_vm1, %v461_v25  ;;  %1773 = vmatprep.subr.msk.mxu0 %vm185_vm1, %v556_v24 }
 0x175   :  { %v552_v26 = vpop.permute.xlu1 %551 }
 0x176   :  { %1775 = vmatprep.mubr.msk.f32.mxu0 %vm185_vm1, %v552_v26 }
 0x177   :  { %v463_v27 = vpop.permute.xlu0 %462  ;;  %1774 = vmatpush3.xpose.msk.msra.mxu0 %vm185_vm1, %v556_v24 }
 0x178   :  { %1769 = vmatmul.mubr.msk.f32.vlgmr.msra.gmra.mxu1 %vm185_vm1, %v463_v27 }
 0x179   :  { %v554_v28 = vpop.permute.xlu1 %553 }
 0x17a   :  { %1776 = vmatmul.mubr.msk.f32.vlgmr.msra.gmra.mxu0 %vm185_vm1, %v554_v28 }
 0x22c   :  { %v1756_v29 = vpop.f32.mrf.mxu1 }
 0x22d   :  { %v362_v30 = vsel %vm358_vm2, %v1756_v29, -inf }
 0x22e   :  { %363 = vmax.xlane.f32.xlu0 %v362_v30  ;;  %v260_v31 = vpop.f32.mrf.mxu1 }
 0x22f   :  { %v359_v32 = vsel %vm358_vm2, %v260_v31, -inf }
 0x230   :  { %360 = vmax.xlane.f32.xlu1 %v359_v32 }
 0x232   :  { %v1763_v33 = vpop.f32.mrf.mxu0 }
 0x233   :  { %v368_v44 = vsel %vm358_vm2, %v1763_v33, -inf }
 0x234   :  { %v349_v36 = vpop.f32.mrf.mxu0 }
 0x235   :  { %v365_v40 = vsel %vm358_vm2, %v349_v36, -inf }
 0x238   :  { %v1770_v34 = vpop.f32.mrf.mxu1 }
 0x239   :  { %v645_v35 = vsel %vm358_vm2, %v1770_v34, -inf }
 0x23a   :  { %v542_v37 = vpop.f32.mrf.mxu1  ;;  %646 = vmax.xlane.f32.xlu1 %v645_v35  ;;  %v1777_v39 = vpop.f32.mrf.mxu0 }
 0x23b   :  { %v642_v38 = vsel %vm358_vm2, %v542_v37, -inf  ;;  %v651_v41 = vsel %vm358_vm2, %v1777_v39, -inf }
 0x23c   :  { %643 = vmax.xlane.f32.xlu0 %v642_v38  ;;  %v633_v42 = vpop.f32.mrf.mxu0 }
 0x23d   :  { %v648_v43 = vsel %vm358_vm2, %v633_v42, -inf }
 0x23e   :  { %366 = vmax.xlane.f32.xlu1 %v365_v40 }
 0x240   :  { %652 = vmax.xlane.f32.xlu0 %v651_v41 }
 0x244   :  { %649 = vmax.xlane.f32.xlu0 %v648_v43 }
 0x248   :  { %369 = vmax.xlane.f32.xlu0 %v368_v44 }
 0x2b7   :  { %v364_v45 = vpop.xlane.xlu0 %363 }
 0x2b8   :  { %v372_v46 = vsub.f32 %v1756_v29, %v364_v45 }
 0x2b9   :  { %v361_v47 = vpop.xlane.xlu1 %360 }
 0x2ba   :  { %v377_v48 = vmul.f32 1.442695, %v372_v46  ;;  %v371_v49 = vsub.f32 %v260_v31, %v361_v47 }
 0x2bc   :  { %1845 = vpow2.f32 %v377_v48  ;;  %v375_v50 = vmul.f32 1.442695, %v371_v49 }
 0x2be   :  { %1847 = vpow2.f32 %v375_v50 }
 0x2c3   :  { %v647_v51 = vpop.xlane.xlu1 %646 }
 0x2c4   :  { %v655_v52 = vsub.f32 %v1770_v34, %v647_v51 }
 0x2c5   :  { %v644_v53 = vpop.xlane.xlu0 %643 }
 0x2c6   :  { %v660_v54 = vmul.f32 1.442695, %v655_v52  ;;  %v654_v55 = vsub.f32 %v542_v37, %v644_v53 }
 0x2c7   :  { %v367_v58 = vpop.xlane.xlu1 %366 }
 0x2c8   :  { %1849 = vpow2.f32 %v660_v54  ;;  %v658_v56 = vmul.f32 1.442695, %v654_v55  ;;  %v373_v63 = vsub.f32 %v349_v36, %v367_v58 }
 0x2c9   :  { %v1846_v57 = vpop.eup %1845  ;;  %v653_v59 = vpop.xlane.xlu0 %652 }
 0x2ca   :  { %1851 = vpow2.f32 %v658_v56  ;;  %v657_v60 = vsub.f32 %v1777_v39, %v653_v59  ;;  %v386_v61 = vsel %vm358_vm2, %v1846_v57, 0.0  ;;  %v379_v4 = vmul.f32 1.442695, %v373_v63 }
 0x2cb   :  { %v1848_v62 = vpop.eup %1847  ;;  %387 = vadd.xlane.f32.xlu0 %v386_v61 }
 0x2cc   :  { %v664_v0 = vmul.f32 1.442695, %v657_v60  ;;  %v383_v1 = vsel %vm358_vm2, %v1848_v62, 0.0 }
 0x2cd   :  { %v650_v2 = vpop.xlane.xlu0 %649  ;;  %384 = vadd.xlane.f32.xlu1 %v383_v1 }
 0x2ce   :  { %1853 = vpow2.f32 %v664_v0  ;;  %v656_v3 = vsub.f32 %v633_v42, %v650_v2 }
 0x2d0   :  { %v662_v5 = vmul.f32 1.442695, %v656_v3 }
 0x2d1   :  { %v370_v6 = vpop.xlane.xlu0 %369 }
 0x2d2   :  { %1855 = vpow2.f32 %v662_v5  ;;  %v374_v7 = vsub.f32 %v1763_v33, %v370_v6 }
 0x2d3   :  { %1857 = vpow2.f32 %v379_v4 }
 0x2d4   :  { %v381_v8 = vmul.f32 1.442695, %v374_v7 }
 0x2d5   :  { %v1850_v9 = vpop.eup %1849 }
 0x2d6   :  { %1859 = vpow2.f32 %v381_v8  ;;  %v669_v11 = vsel %vm358_vm2, %v1850_v9, 0.0 }
 0x2d7   :  { %v1852_v13 = vpop.eup %1851  ;;  %670 = vadd.xlane.f32.xlu0 %v669_v11 }
 0x2d8   :  { %v666_v15 = vsel %vm358_vm2, %v1852_v13, 0.0 }
 0x2d9   :  { %667 = vadd.xlane.f32.xlu1 %v666_v15 }
 0x2db   :  { %v1854_v17 = vpop.eup %1853 }
 0x2dc   :  { %v675_v18 = vsel %vm358_vm2, %v1854_v17, 0.0 }
 0x2dd   :  { %676 = vadd.xlane.f32.xlu0 %v675_v18 }
 0x2df   :  { %v1856_v19 = vpop.eup %1855 }
 0x2e0   :  { %v672_v20 = vsel %vm358_vm2, %v1856_v19, 0.0  ;;  %v1858_v21 = vpop.eup %1857 }
 0x2e1   :  { %673 = vadd.xlane.f32.xlu1 %v672_v20  ;;  %v389_v24 = vsel %vm358_vm2, %v1858_v21, 0.0 }
 0x2e3   :  { %v1860_v22 = vpop.eup %1859 }
 0x2e4   :  { %v392_v23 = vsel %vm358_vm2, %v1860_v22, 0.0 }
 0x2e5   :  { %393 = vadd.xlane.f32.xlu0 %v392_v23  ;;  %390 = vadd.xlane.f32.xlu1 %v389_v24 }
 0x354   :  { %v388_v25 = vpop.xlane.xlu0 %387 }
 0x355   :  { %1861 = vrcp.f32 %v388_v25 }
 0x356   :  { %v385_v26 = vpop.xlane.xlu1 %384 }
 0x357   :  { %1863 = vrcp.f32 %v385_v26 }
 0x360   :  { %v671_v27 = vpop.xlane.xlu0 %670 }
 0x361   :  { %1865 = vrcp.f32 %v671_v27 }
 0x362   :  { %v1862_v28 = vpop.eup %1861  ;;  %v668_v29 = vpop.xlane.xlu1 %667 }
 0x363   :  { %1867 = vrcp.f32 %v668_v29  ;;  %v400_v30 = vmul.f32 %v1862_v28, %v1846_v57  ;;  %v176_v29 = vld [vmem:[#allocation7 + $0x8] sm:$0xff] }
 0x364   :  { %v1864_v31 = vpop.eup %1863 }
 0x365   :  { %v399_v32 = vmul.f32 %v1864_v31, %v1848_v62  ;;  %v404_v35 = vsel %vm358_vm2, %v400_v30, 0.0  ;;  %v2004_v30 = vmov 0.0  }
 0x366   :  { %v677_v33 = vpop.xlane.xlu0 %676  ;;  %1778 = vmatprep.subr.mxu1 %v2004_v30  ;;  %1780 = vmatprep.mubr.msk.f32.mxu1 %vm2005_vm3, %v2004_v30 }
 0x367   :  { %1869 = vrcp.f32 %v677_v33  ;;  %v403_v34 = vsel %vm358_vm2, %v399_v32, 0.0  ;;  %1779 = vmatpush3.msra.mxu1 %v176_v29 }
 0x368   :  { %v405_v36 = vadd.f32 %v404_v35, %v403_v34  ;;  %1783 = vmatprep.subr.mxu1 %v2004_v30 }
 0x36a   :  { %v674_v37 = vpop.xlane.xlu1 %673  ;;  %v406_v38 = vrot.slane %v405_v36, 4 }
 0x36b   :  { %1871 = vrcp.f32 %v674_v37 }
 0x36c   :  { %v407_v39 = vadd.f32 %v406_v38, %v405_v36 }
 0x36e   :  { %v1866_v40 = vpop.eup %1865  ;;  %v394_v41 = vpop.xlane.xlu0 %393  ;;  %v408_v43 = vrot.slane %v407_v39, 2 }
 0x36f   :  { %v391_v42 = vpop.xlane.xlu1 %390  ;;  %1873 = vrcp.f32 %v394_v41  ;;  %v683_v44 = vmul.f32 %v1866_v40, %v1850_v9 }
 0x370   :  { %v1868_v45 = vpop.eup %1867  ;;  %1875 = vrcp.f32 %v391_v42  ;;  %v409_v46 = vadd.f32 %v408_v43, %v407_v39 }
 0x371   :  { %v682_v47 = vmul.f32 %v1868_v45, %v1852_v13  ;;  %v687_v50 = vsel %vm358_vm2, %v683_v44, 0.0 }
 0x372   :  { %v410_v48 = vrot.slane %v409_v46, 1 }
 0x373   :  { %v686_v49 = vsel %vm358_vm2, %v682_v47, 0.0 }
 0x374   :  { %v1870_v51 = vpop.eup %1869  ;;  %v411_v52 = vadd.f32 %v410_v48, %v409_v46  ;;  %v688_v53 = vadd.f32 %v687_v50, %v686_v49 }
 0x375   :  { %v685_v56 = vmul.f32 %v1870_v51, %v1854_v17 }
 0x376   :  { %v421_v54 = vmul.f32 0.0625, %v411_v52  ;;  %v689_v55 = vrot.slane %v688_v53, 4 }
 0x377   :  { %v696_v62 = vsel %vm358_vm2, %v685_v56, 0.0 }
 0x378   :  { %v1872_v57 = vpop.eup %1871  ;;  %428 = vbcast.lane.b32.xlu1 %v421_v54, 264  ;;  %424 = vbcast.lane.b32.xlu0 %v421_v54, 256  ;;  %v690_v58 = vadd.f32 %v689_v55, %v688_v53 }
 0x379   :  { %v684_v59 = vmul.f32 %v1872_v57, %v1856_v19 }
 0x37a   :  { %v691_v60 = vrot.slane %v690_v58, 2 }
 0x37b   :  { %v695_v61 = vsel %vm358_vm2, %v684_v59, 0.0 }
 0x37c   :  { %v1874_v63 = vpop.eup %1873  ;;  %v692_v0 = vadd.f32 %v691_v60, %v690_v58  ;;  %v697_v1 = vadd.f32 %v696_v62, %v695_v61 }
 0x37d   :  { %v1876_v2 = vpop.eup %1875  ;;  %v402_v3 = vmul.f32 %v1874_v63, %v1860_v22 }
 0x37e   :  { %v693_v4 = vrot.slane %v692_v0, 1  ;;  %v698_v5 = vrot.slane %v697_v1, 4  ;;  %v401_v6 = vmul.f32 %v1876_v2, %v1858_v21 }
 0x37f   :  { %v413_v7 = vsel %vm358_vm2, %v402_v3, 0.0 }
 0x380   :  { %v694_v8 = vadd.f32 %v693_v4, %v692_v0  ;;  %v699_v9 = vadd.f32 %v698_v5, %v697_v1  ;;  %v412_v11 = vsel %vm358_vm2, %v401_v6, 0.0 }
 0x381   :  { %v414_v13 = vadd.f32 %v413_v7, %v412_v11 }
 0x382   :  { %v704_v15 = vmul.f32 0.0625, %v694_v8  ;;  %v700_v17 = vrot.slane %v699_v9, 2 }
 0x383   :  { %v415_v18 = vrot.slane %v414_v13, 4 }
 0x384   :  { %711 = vbcast.lane.b32.xlu0 %v704_v15, 264  ;;  %707 = vbcast.lane.b32.xlu1 %v704_v15, 256  ;;  %v701_v19 = vadd.f32 %v700_v17, %v699_v9 }
 0x385   :  { %v416_v20 = vadd.f32 %v415_v18, %v414_v13 }
 0x386   :  { %v702_v23 = vrot.slane %v701_v19, 1 }
 0x387   :  { %v417_v24 = vrot.slane %v416_v20, 2 }
 0x388   :  { %v703_v22 = vadd.f32 %v702_v23, %v701_v19 }
 0x389   :  { %v418_v25 = vadd.f32 %v417_v24, %v416_v20 }
 0x38a   :  { %v705_v26 = vmul.f32 0.0625, %v703_v22 }
 0x38b   :  { %v419_v21 = vrot.slane %v418_v25, 1 }
 0x38c   :  { %714 = vbcast.lane.b32.xlu1 %v705_v26, 256 }
 0x38d   :  { %v420_v27 = vadd.f32 %v419_v21, %v418_v25 }
 0x38f   :  { %v422_v28 = vmul.f32 0.0625, %v420_v27  ;;  %v175_v27 = vld [vmem:[#allocation7] sm:$0xff] }
 0x390   :  { %718 = vbcast.lane.b32.xlu1 %v705_v26, 264 }
 0x391   :  { %431 = vbcast.lane.b32.xlu0 %v422_v28, 256 }
 0x394   :  { %435 = vbcast.lane.b32.xlu1 %v422_v28, 264 }
 0x395   :  { %995 = vrot.lane.b32.xlu0 %v2065_v14, %s2003_s11 }
 0x398   :  { %904 = vrot.lane.b32.xlu1 %v2060_v10, %s2003_s11 }
 0x3ea   :  { %v425_v31 = vpop.permute.xlu0 %424  ;;  %v429_v32 = vpop.permute.xlu1 %428 }
 0x3eb   :  { %v437_v35 = vmul.f32 %v425_v31, %v2062_v12  ;;  %v438_v36 = vmul.f32 %v429_v32, %v2060_v10 }
 0x3ed   :  { %v442_v42 = vsel %vm441_vm5, %v437_v35, 0.0  ;;  %v443_v43 = vsel %vm441_vm5, %v438_v36, 0.0 }
 0x3ee   :  { %v444_v44 = vadd.f32 %v443_v43, %v442_v42 }
 0x3f0   :  { %v445_v48 = vrot.slane %v444_v44, 4 }
 0x3f2   :  { %v446_v56 = vadd.f32 %v445_v48, %v444_v44 }
 0x3f4   :  { %v447_v0 = vrot.slane %v446_v56, 2 }
 0x3f6   :  { %v712_v33 = vpop.permute.xlu0 %711  ;;  %v708_v34 = vpop.permute.xlu1 %707  ;;  %v448_v7 = vadd.f32 %v447_v0, %v446_v56 }
 0x3f7   :  { %v721_v37 = vmul.f32 %v712_v33, %v2060_v10  ;;  %v720_v38 = vmul.f32 %v708_v34, %v2062_v12 }
 0x3f8   :  { %v449_v20 = vrot.slane %v448_v7, 1 }
 0x3f9   :  { %v726_v39 = vsel %vm724_vm4, %v721_v37, 0.0  ;;  %v725_v40 = vsel %vm724_vm4, %v720_v38, 0.0 }
 0x3fa   :  { %v727_v41 = vadd.f32 %v726_v39, %v725_v40  ;;  %v450_v22 = vadd.f32 %v449_v20, %v448_v7 }
 0x3fc   :  { %v728_v45 = vrot.slane %v727_v41, 4 }
 0x3fe   :  { %v715_v46 = vpop.permute.xlu1 %714  ;;  %v729_v49 = vadd.f32 %v728_v45, %v727_v41 }
 0x3ff   :  { %v722_v47 = vmul.f32 %v715_v46, %v2070_v16 }
 0x400   :  { %v730_v57 = vrot.slane %v729_v49, 2 }
 0x401   :  { %v734_v53 = vsel %vm724_vm4, %v722_v47, 0.0 }
 0x402   :  { %v719_v50 = vpop.permute.xlu1 %718  ;;  %v731_v1 = vadd.f32 %v730_v57, %v729_v49 }
 0x403   :  { %v432_v51 = vpop.permute.xlu0 %431  ;;  %v723_v52 = vmul.f32 %v719_v50, %v2065_v14 }
 0x404   :  { %v439_v54 = vmul.f32 %v432_v51, %v2070_v16  ;;  %v732_v11 = vrot.slane %v731_v1, 1 }
 0x405   :  { %v735_v55 = vsel %vm724_vm4, %v723_v52, 0.0 }
 0x406   :  { %v736_v58 = vadd.f32 %v735_v55, %v734_v53  ;;  %v436_v59 = vpop.permute.xlu1 %435  ;;  %v451_v62 = vsel %vm441_vm5, %v439_v54, 0.0  ;;  %v733_v18 = vadd.f32 %v732_v11, %v731_v1 }
 0x407   :  { %v440_v60 = vmul.f32 %v436_v59, %v2065_v14  ;;  %v996_v21 = vpop.permute.xlu0 %995 }
 0x408   :  { %v737_v61 = vrot.slane %v736_v58, 4 }
 0x409   :  { %v452_v63 = vsel %vm441_vm5, %v440_v60, 0.0 }
 0x40a   :  { %v738_v2 = vadd.f32 %v737_v61, %v736_v58  ;;  %v453_v3 = vadd.f32 %v452_v63, %v451_v62  ;;  %v905_v4 = vpop.permute.xlu1 %904 }
 0x40b   :  { %1788 = vmatprep.subr.msk.mxu0 %vm185_vm1, %v905_v4 }
 0x40c   :  { %v739_v5 = vrot.slane %v738_v2, 2  ;;  %v454_v6 = vrot.slane %v453_v3, 4  ;;  %1789 = vmatpush3.xpose.msk.msra.mxu0 %vm185_vm1, %v905_v4 }
 0x40e   :  { %v740_v8 = vadd.f32 %v739_v5, %v738_v2  ;;  %v455_v9 = vadd.f32 %v454_v6, %v453_v3 }
 0x410   :  { %v456_v13 = vrot.slane %v455_v9, 2  ;;  %v741_v15 = vrot.slane %v740_v8, 1 }
 0x412   :  { %v457_v17 = vadd.f32 %v456_v13, %v455_v9  ;;  %v742_v19 = vadd.f32 %v741_v15, %v740_v8 }
 0x414   :  { %v746_v23 = vsel %vm745_vm6, %v742_v19, %v733_v18  ;;  %v458_v24 = vrot.slane %v457_v17, 1 }
 0x415   :  { %747 = vrot.lane.b32.xlu0 %v746_v23, %s2006_s12 }
 0x416   :  { %v459_v25 = vadd.f32 %v458_v24, %v457_v17 }
 0x418   :  { %v823_v26 = vsel %vm745_vm6, %v459_v25, %v450_v22 }
 0x419   :  { %902 = vrot.lane.b32.xlu0 %v2062_v12, %s2003_s11  ;;  %824 = vrot.lane.b32.xlu1 %v823_v26, %s2007_s13 }
 0x41d   :  { %898 = vrot.lane.b32.xlu0 %v2062_v12, %s2008_s14  ;;  %993 = vrot.lane.b32.xlu1 %v2070_v16, %s2003_s11 }
 0x421   :  { %900 = vrot.lane.b32.xlu0 %v2060_v10, %s2008_s14  ;;  %989 = vrot.lane.b32.xlu1 %v2070_v16, %s2008_s14 }
 0x425   :  { %991 = vrot.lane.b32.xlu1 %v2065_v14, %s2008_s14 }
 0x487   :  { %v748_v28 = vpop.permute.xlu0 %747 }
 0x488   :  { %1781 = vmatmul.mubr.msk.f32.vlgmr.msra.gmra.mxu1 %vm185_vm1, %v748_v28 }
 0x489   :  { %1784 = vmatpush3.msra.mxu1 %v175_v27  ;;  %1785 = vmatprep.mubr.msk.f32.mxu1 %vm2005_vm3, %v2004_v30 }
 0x48a   :  { %1795 = vmatprep.subr.msk.mxu1 %vm185_vm1, %v996_v21 }
 0x48b   :  { %v903_v29 = vpop.permute.xlu0 %902  ;;  %v825_v31 = vpop.permute.xlu1 %824 }
 0x48c   :  { %1786 = vmatmul.mubr.msk.f32.vlgmr.msra.gmra.mxu1 %vm185_vm1, %v825_v31  ;;  %1790 = vmatprep.subr.msk.mxu0 %vm185_vm1, %v903_v29 }
 0x48d   :  { %1796 = vmatpush3.xpose.msk.msra.mxu1 %vm185_vm1, %v996_v21  ;;  %1791 = vmatpush3.xpose.msk.msra.mxu0 %vm185_vm1, %v903_v29 }
 0x48e   :  { %1802 = vmatprep.subr.mxu0 %v2004_v30 }
 0x48f   :  { %v899_v32 = vpop.permute.xlu0 %898  ;;  %v994_v33 = vpop.permute.xlu1 %993 }
 0x490   :  { %1792 = vmatprep.mubr.msk.f32.mxu0 %vm185_vm1, %v899_v32  ;;  %1797 = vmatprep.subr.msk.mxu1 %vm185_vm1, %v994_v33 }
 0x491   :  { %1798 = vmatpush3.xpose.msk.msra.mxu1 %vm185_vm1, %v994_v33 }
 0x493   :  { %v901_v34 = vpop.permute.xlu0 %900  ;;  %v990_v35 = vpop.permute.xlu1 %989 }
 0x494   :  { %1793 = vmatmul.mubr.msk.f32.vlgmr.msra.gmra.mxu0 %vm185_vm1, %v901_v34  ;;  %1799 = vmatprep.mubr.msk.f32.mxu1 %vm185_vm1, %v990_v35 }
 0x495   :  { %1804 = vmatprep.mubr.msk.f32.mxu0 %vm2005_vm3, %v2004_v30 }
 0x497   :  { %v992_v36 = vpop.permute.xlu1 %991 }
 0x498   :  { %1800 = vmatmul.mubr.msk.f32.vlgmr.msra.gmra.mxu1 %vm185_vm1, %v992_v36 }
 0x548   :  { %v817_v37 = vpop.f32.mrf.mxu1 }
 0x54a   :  { %v1782_v38 = vpop.f32.mrf.mxu1 }
 0x54c   :  { %v894_v39 = vpop.f32.mrf.mxu1 }
 0x54d   :  { %v2185_v40 = vadd.f32 %v894_v39, %v817_v37 }
 0x54e   :  { %v1787_v41 = vpop.f32.mrf.mxu1 }
 0x554   :  { %v1794_v42 = vpop.f32.mrf.mxu0 }
 0x555   :  { %v1083_v43 = vsel %vm358_vm2, %v1794_v42, -inf }
 0x556   :  { %1084 = vmax.xlane.f32.xlu1 %v1083_v43  ;;  %v980_v44 = vpop.f32.mrf.mxu0 }
 0x557   :  { %v1080_v45 = vsel %vm358_vm2, %v980_v44, -inf }
 0x558   :  { %1081 = vmax.xlane.f32.xlu0 %v1080_v45  ;;  %v1801_v46 = vpop.f32.mrf.mxu1 }
 0x559   :  { %v1089_v49 = vsel %vm358_vm2, %v1801_v46, -inf }
 0x55a   :  { %v1071_v47 = vpop.f32.mrf.mxu1 }
 0x55b   :  { %v1086_v48 = vsel %vm358_vm2, %v1071_v47, -inf }
 0x55c   :  { %1087 = vmax.xlane.f32.xlu0 %v1086_v48 }
 0x560   :  { %1090 = vmax.xlane.f32.xlu0 %v1089_v49 }
 0x5df   :  { %v1085_v50 = vpop.xlane.xlu1 %1084 }
 0x5e0   :  { %v1093_v51 = vsub.f32 %v1794_v42, %v1085_v50  ;;  %v177_v42 = vld [vmem:[#allocation7 + $0x10] sm:$0xff] }
 0x5e1   :  { %v1082_v52 = vpop.xlane.xlu0 %1081  ;;  %1803 = vmatpush3.msra.mxu0 %v177_v42 }
 0x5e2   :  { %v1098_v53 = vmul.f32 1.442695, %v1093_v51  ;;  %v1092_v54 = vsub.f32 %v980_v44, %v1082_v52 }
 0x5e4   :  { %1877 = vpow2.f32 %v1098_v53  ;;  %v1096_v55 = vmul.f32 1.442695, %v1092_v54 }
 0x5e5   :  { %v1088_v56 = vpop.xlane.xlu0 %1087 }
 0x5e6   :  { %1879 = vpow2.f32 %v1096_v55  ;;  %v1094_v57 = vsub.f32 %v1071_v47, %v1088_v56 }
 0x5e8   :  { %v1100_v58 = vmul.f32 1.442695, %v1094_v57 }
 0x5e9   :  { %v1091_v59 = vpop.xlane.xlu0 %1090 }
 0x5ea   :  { %1881 = vpow2.f32 %v1100_v58  ;;  %v1095_v60 = vsub.f32 %v1801_v46, %v1091_v59 }
 0x5ec   :  { %v1102_v61 = vmul.f32 1.442695, %v1095_v60 }
 0x5ee   :  { %1883 = vpow2.f32 %v1102_v61 }
 0x5f1   :  { %v1878_v62 = vpop.eup %1877 }
 0x5f2   :  { %v1107_v63 = vsel %vm358_vm2, %v1878_v62, 0.0 }
 0x5f3   :  { %v1880_v0 = vpop.eup %1879  ;;  %1108 = vadd.xlane.f32.xlu0 %v1107_v63 }
 0x5f4   :  { %v1104_v1 = vsel %vm358_vm2, %v1880_v0, 0.0 }
 0x5f5   :  { %1105 = vadd.xlane.f32.xlu1 %v1104_v1 }
 0x5f7   :  { %v1882_v2 = vpop.eup %1881 }
 0x5f8   :  { %v1110_v3 = vsel %vm358_vm2, %v1882_v2, 0.0 }
 0x5f9   :  { %1111 = vadd.xlane.f32.xlu1 %v1110_v3 }
 0x5fb   :  { %v1884_v4 = vpop.eup %1883 }
 0x5fc   :  { %v1113_v5 = vsel %vm358_vm2, %v1884_v4, 0.0 }
 0x5fd   :  { %1114 = vadd.xlane.f32.xlu0 %v1113_v5 }
 0x67c   :  { %v1109_v6 = vpop.xlane.xlu0 %1108 }
 0x67d   :  { %1885 = vrcp.f32 %v1109_v6 }
 0x67e   :  { %v1106_v7 = vpop.xlane.xlu1 %1105 }
 0x67f   :  { %1887 = vrcp.f32 %v1106_v7 }
 0x682   :  { %v1112_v8 = vpop.xlane.xlu1 %1111 }
 0x683   :  { %1889 = vrcp.f32 %v1112_v8 }
 0x686   :  { %v1115_v9 = vpop.xlane.xlu0 %1114 }
 0x687   :  { %1891 = vrcp.f32 %v1115_v9 }
 0x68a   :  { %v1886_v11 = vpop.eup %1885 }
 0x68b   :  { %v1121_v13 = vmul.f32 %v1886_v11, %v1878_v62 }
 0x68c   :  { %v1888_v15 = vpop.eup %1887 }
 0x68d   :  { %v1120_v17 = vmul.f32 %v1888_v15, %v1880_v0  ;;  %v1125_v19 = vsel %vm358_vm2, %v1121_v13, 0.0 }
 0x68f   :  { %v1124_v18 = vsel %vm358_vm2, %v1120_v17, 0.0 }
 0x690   :  { %v1890_v20 = vpop.eup %1889  ;;  %v1126_v23 = vadd.f32 %v1125_v19, %v1124_v18 }
 0x691   :  { %v1122_v22 = vmul.f32 %v1890_v20, %v1882_v2 }
 0x692   :  { %v1127_v24 = vrot.slane %v1126_v23, 4 }
 0x693   :  { %v1133_v28 = vsel %vm358_vm2, %v1122_v22, 0.0 }
 0x694   :  { %v1892_v25 = vpop.eup %1891  ;;  %v1128_v26 = vadd.f32 %v1127_v24, %v1126_v23 }
 0x695   :  { %v1123_v21 = vmul.f32 %v1892_v25, %v1884_v4 }
 0x696   :  { %v1129_v27 = vrot.slane %v1128_v26, 2 }
 0x697   :  { %v1134_v29 = vsel %vm358_vm2, %v1123_v21, 0.0 }
 0x698   :  { %v1130_v31 = vadd.f32 %v1129_v27, %v1128_v26  ;;  %v1135_v32 = vadd.f32 %v1134_v29, %v1133_v28 }
 0x69a   :  { %v1131_v33 = vrot.slane %v1130_v31, 1  ;;  %v1136_v34 = vrot.slane %v1135_v32, 4 }
 0x69c   :  { %v1132_v35 = vadd.f32 %v1131_v33, %v1130_v31  ;;  %v1137_v36 = vadd.f32 %v1136_v34, %v1135_v32 }
 0x69e   :  { %v1142_v37 = vmul.f32 0.0625, %v1132_v35  ;;  %v1138_v38 = vrot.slane %v1137_v36, 2 }
 0x6a0   :  { %1149 = vbcast.lane.b32.xlu0 %v1142_v37, 264  ;;  %1145 = vbcast.lane.b32.xlu1 %v1142_v37, 256  ;;  %v1139_v39 = vadd.f32 %v1138_v38, %v1137_v36 }
 0x6a2   :  { %v1140_v41 = vrot.slane %v1139_v39, 1 }
 0x6a4   :  { %1265 = vrot.lane.b32.xlu0 %v2060_v10, %s2009_s15  ;;  %v1141_v43 = vadd.f32 %v1140_v41, %v1139_v39 }
 0x6a6   :  { %v1143_v44 = vmul.f32 0.0625, %v1141_v43 }
 0x6a8   :  { %1354 = vrot.lane.b32.xlu0 %v2070_v16, %s2009_s15  ;;  %1152 = vbcast.lane.b32.xlu1 %v1143_v44, 256 }
 0x6ac   :  { %1156 = vbcast.lane.b32.xlu1 %v1143_v44, 264 }
 0x6b0   :  { %1356 = vrot.lane.b32.xlu1 %v2065_v14, %s2009_s15 }
 0x6b4   :  { %1263 = vrot.lane.b32.xlu1 %v2062_v12, %s2009_s15 }
 0x6b8   :  { %1259 = vrot.lane.b32.xlu1 %v2062_v12, %s2010_s16 }
 0x6bc   :  { %1261 = vrot.lane.b32.xlu1 %v2060_v10, %s2010_s16 }
 0x712   :  { %v1150_v45 = vpop.permute.xlu0 %1149  ;;  %v1146_v46 = vpop.permute.xlu1 %1145 }
 0x713   :  { %v1159_v47 = vmul.f32 %v1150_v45, %v2060_v10  ;;  %v1158_v48 = vmul.f32 %v1146_v46, %v2062_v12 }
 0x715   :  { %v1164_v49 = vsel %vm1162_vm7, %v1159_v47, 0.0  ;;  %v1163_v50 = vsel %vm1162_vm7, %v1158_v48, 0.0 }
 0x716   :  { %v1165_v51 = vadd.f32 %v1164_v49, %v1163_v50  ;;  %v1266_v52 = vpop.permute.xlu0 %1265 }
 0x717   :  { %1807 = vmatprep.subr.msk.mxu1 %vm185_vm1, %v1266_v52 }
 0x718   :  { %1808 = vmatpush3.xpose.msk.msra.mxu1 %vm185_vm1, %v1266_v52  ;;  %v1166_v53 = vrot.slane %v1165_v51, 4 }
 0x71a   :  { %v1153_v54 = vpop.permute.xlu1 %1152  ;;  %v1167_v56 = vadd.f32 %v1166_v53, %v1165_v51  ;;  %v1355_v17 = vpop.permute.xlu0 %1354 }
 0x71b   :  { %v1160_v55 = vmul.f32 %v1153_v54, %v2070_v16 }
 0x71c   :  { %v1168_v61 = vrot.slane %v1167_v56, 2 }
 0x71d   :  { %v1172_v59 = vsel %vm1162_vm7, %v1160_v55, 0.0 }
 0x71e   :  { %v1157_v57 = vpop.permute.xlu1 %1156  ;;  %v1169_v1 = vadd.f32 %v1168_v61, %v1167_v56 }
 0x71f   :  { %v1161_v58 = vmul.f32 %v1157_v57, %v2065_v14 }
 0x720   :  { %v1170_v7 = vrot.slane %v1169_v1, 1 }
 0x721   :  { %v1173_v60 = vsel %vm1162_vm7, %v1161_v58, 0.0 }
 0x722   :  { %v1174_v62 = vadd.f32 %v1173_v60, %v1172_v59  ;;  %v1357_v63 = vpop.permute.xlu1 %1356  ;;  %v1171_v11 = vadd.f32 %v1170_v7, %v1169_v1 }
 0x723   :  { %1814 = vmatprep.subr.msk.mxu0 %vm185_vm1, %v1357_v63 }
 0x724   :  { %v1175_v0 = vrot.slane %v1174_v62, 4 }
 0x726   :  { %v1176_v2 = vadd.f32 %v1175_v0, %v1174_v62  ;;  %v1264_v3 = vpop.permute.xlu1 %1263 }
 0x727   :  { %1809 = vmatprep.subr.msk.mxu1 %vm185_vm1, %v1264_v3 }
 0x728   :  { %v1177_v4 = vrot.slane %v1176_v2, 2  ;;  %1810 = vmatpush3.xpose.msk.msra.mxu1 %vm185_vm1, %v1264_v3 }
 0x729   :  { %1821 = vmatprep.subr.mxu1 %v2004_v30 }
 0x72a   :  { %v1178_v5 = vadd.f32 %v1177_v4, %v1176_v2  ;;  %v1260_v6 = vpop.permute.xlu1 %1259 }
 0x72b   :  { %1811 = vmatprep.mubr.msk.f32.mxu1 %vm185_vm1, %v1260_v6 }
 0x72c   :  { %v1179_v8 = vrot.slane %v1178_v5, 1 }
 0x72e   :  { %v1262_v9 = vpop.permute.xlu1 %1261  ;;  %v1180_v13 = vadd.f32 %v1179_v8, %v1178_v5 }
 0x72f   :  { %1812 = vmatmul.mubr.msk.f32.vlgmr.msra.gmra.mxu1 %vm185_vm1, %v1262_v9 }
 0x730   :  { %v1183_v15 = vsel %vm745_vm6, %v1180_v13, %v1171_v11  ;;  %1823 = vmatprep.mubr.msk.f32.mxu1 %vm2005_vm3, %v2004_v30 }
 0x731   :  { %1184 = vrot.lane.b32.xlu0 %v1183_v15, %s2011_s17 }
 0x735   :  { %1350 = vrot.lane.b32.xlu0 %v2070_v16, %s2010_s16 }
 0x739   :  { %1352 = vrot.lane.b32.xlu0 %v2065_v14, %s2010_s16 }
 0x7a3   :  { %v1185_v18 = vpop.permute.xlu0 %1184 }
 0x7a4   :  { %1805 = vmatmul.mubr.msk.f32.vlgmr.msra.gmra.mxu0 %vm185_vm1, %v1185_v18 }
 0x7a5   :  { %1815 = vmatpush3.xpose.msk.msra.mxu0 %vm185_vm1, %v1357_v63 }
 0x7a6   :  { %1816 = vmatprep.subr.msk.mxu0 %vm185_vm1, %v1355_v17 }
 0x7a7   :  { %v1351_v19 = vpop.permute.xlu0 %1350 }
 0x7a8   :  { %1818 = vmatprep.mubr.msk.f32.mxu0 %vm185_vm1, %v1351_v19 }
 0x7a9   :  { %1817 = vmatpush3.xpose.msk.msra.mxu0 %vm185_vm1, %v1355_v17 }
 0x7ab   :  { %v1353_v30 = vpop.permute.xlu0 %1352 }
 0x7ac   :  { %1819 = vmatmul.mubr.msk.f32.vlgmr.msra.gmra.mxu0 %vm185_vm1, %v1353_v30 }
 0x7ef   :  { %v1813_v20 = vpop.f32.mrf.mxu1 }
 0x7f0   :  { %v1444_v23 = vsel %vm358_vm2, %v1813_v20, -inf }
 0x7f1   :  { %1445 = vmax.xlane.f32.xlu0 %v1444_v23  ;;  %v1341_v24 = vpop.f32.mrf.mxu1 }
 0x7f2   :  { %v1441_v22 = vsel %vm358_vm2, %v1341_v24, -inf }
 0x7f3   :  { %1442 = vmax.xlane.f32.xlu1 %v1441_v22  ;;  %v178_v22 = vld [vmem:[#allocation7 + $0x18] sm:$0xff] }
 0x7f4   :  { %1822 = vmatpush3.msra.mxu1 %v178_v22 }
 0x864   :  { %v1254_v25 = vpop.f32.mrf.mxu0 }
 0x865   :  { %v2239_v26 = vadd.f32 %v1254_v25, %v2185_v40 }
 0x866   :  { %v1806_v21 = vpop.f32.mrf.mxu0 }
 0x86c   :  { %v1820_v27 = vpop.f32.mrf.mxu0 }
 0x86d   :  { %v1450_v28 = vsel %vm358_vm2, %v1820_v27, -inf }
 0x86e   :  { %v1432_v29 = vpop.f32.mrf.mxu0  ;;  %1451 = vmax.xlane.f32.xlu1 %v1450_v28 }
 0x86f   :  { %v1447_v31 = vsel %vm358_vm2, %v1432_v29, -inf }
 0x870   :  { %1448 = vmax.xlane.f32.xlu0 %v1447_v31 }
 0x87a   :  { %v1446_v32 = vpop.xlane.xlu0 %1445 }
 0x87b   :  { %v1454_v33 = vsub.f32 %v1813_v20, %v1446_v32 }
 0x87c   :  { %v1443_v34 = vpop.xlane.xlu1 %1442 }
 0x87d   :  { %v1459_v35 = vmul.f32 1.442695, %v1454_v33  ;;  %v1453_v36 = vsub.f32 %v1341_v24, %v1443_v34 }
 0x87f   :  { %1893 = vpow2.f32 %v1459_v35  ;;  %v1457_v37 = vmul.f32 1.442695, %v1453_v36 }
 0x881   :  { %1895 = vpow2.f32 %v1457_v37 }
 0x88c   :  { %v1894_v38 = vpop.eup %1893 }
 0x88d   :  { %v1468_v40 = vsel %vm358_vm2, %v1894_v38, 0.0 }
 0x88e   :  { %v1896_v39 = vpop.eup %1895  ;;  %1469 = vadd.xlane.f32.xlu1 %v1468_v40 }
 0x88f   :  { %v1465_v41 = vsel %vm358_vm2, %v1896_v39, 0.0 }
 0x890   :  { %1466 = vadd.xlane.f32.xlu0 %v1465_v41 }
 0x8f7   :  { %v1452_v42 = vpop.xlane.xlu1 %1451 }
 0x8f8   :  { %v1456_v43 = vsub.f32 %v1820_v27, %v1452_v42 }
 0x8f9   :  { %v1449_v44 = vpop.xlane.xlu0 %1448 }
 0x8fa   :  { %v1463_v45 = vmul.f32 1.442695, %v1456_v43  ;;  %v1455_v46 = vsub.f32 %v1432_v29, %v1449_v44 }
 0x8fc   :  { %1897 = vpow2.f32 %v1463_v45  ;;  %v1461_v47 = vmul.f32 1.442695, %v1455_v46 }
 0x8fe   :  { %1899 = vpow2.f32 %v1461_v47 }
 0x909   :  { %v1898_v48 = vpop.eup %1897 }
 0x90a   :  { %v1474_v49 = vsel %vm358_vm2, %v1898_v48, 0.0 }
 0x90b   :  { %v1900_v50 = vpop.eup %1899  ;;  %1475 = vadd.xlane.f32.xlu1 %v1474_v49 }
 0x90c   :  { %v1471_v51 = vsel %vm358_vm2, %v1900_v50, 0.0 }
 0x90d   :  { %1472 = vadd.xlane.f32.xlu0 %v1471_v51  ;;  %v1687_v51 = vld [vmem:[%s2268_s4] ss:$0 sm:$0xff] }
 0x917   :  { %v1470_v52 = vpop.xlane.xlu1 %1469 }
 0x918   :  { %1901 = vrcp.f32 %v1470_v52 }
 0x919   :  { %v1467_v53 = vpop.xlane.xlu0 %1466 }
 0x91a   :  { %1903 = vrcp.f32 %v1467_v53 }
 0x925   :  { %v1902_v54 = vpop.eup %1901 }
 0x926   :  { %v1482_v55 = vmul.f32 %v1902_v54, %v1894_v38 }
 0x927   :  { %v1904_v56 = vpop.eup %1903 }
 0x928   :  { %v1481_v57 = vmul.f32 %v1904_v56, %v1896_v39  ;;  %v1486_v59 = vsel %vm358_vm2, %v1482_v55, 0.0 }
 0x92a   :  { %v1485_v58 = vsel %vm358_vm2, %v1481_v57, 0.0 }
 0x92b   :  { %v1487_v60 = vadd.f32 %v1486_v59, %v1485_v58 }
 0x92d   :  { %v1488_v61 = vrot.slane %v1487_v60, 4 }
 0x92f   :  { %v1489_v62 = vadd.f32 %v1488_v61, %v1487_v60 }
 0x931   :  { %v1490_v63 = vrot.slane %v1489_v62, 2 }
 0x933   :  { %v1491_v0 = vadd.f32 %v1490_v63, %v1489_v62 }
 0x935   :  { %v1492_v1 = vrot.slane %v1491_v0, 1 }
 0x937   :  { %v1493_v2 = vadd.f32 %v1492_v1, %v1491_v0 }
 0x939   :  { %v1503_v3 = vmul.f32 0.0625, %v1493_v2 }
 0x93b   :  { %1510 = vbcast.lane.b32.xlu1 %v1503_v3, 264  ;;  %1506 = vbcast.lane.b32.xlu0 %v1503_v3, 256 }
 0x994   :  { %v1476_v4 = vpop.xlane.xlu1 %1475 }
 0x995   :  { %1905 = vrcp.f32 %v1476_v4 }
 0x996   :  { %v1473_v5 = vpop.xlane.xlu0 %1472 }
 0x997   :  { %1907 = vrcp.f32 %v1473_v5 }
 0x9a2   :  { %v1906_v6 = vpop.eup %1905 }
 0x9a3   :  { %v1484_v7 = vmul.f32 %v1906_v6, %v1898_v48 }
 0x9a4   :  { %v1908_v8 = vpop.eup %1907 }
 0x9a5   :  { %v1483_v9 = vmul.f32 %v1908_v8, %v1900_v50  ;;  %v1495_v13 = vsel %vm358_vm2, %v1484_v7, 0.0 }
 0x9a7   :  { %v1494_v11 = vsel %vm358_vm2, %v1483_v9, 0.0 }
 0x9a8   :  { %v1496_v15 = vadd.f32 %v1495_v13, %v1494_v11 }
 0x9aa   :  { %v1497_v17 = vrot.slane %v1496_v15, 4 }
 0x9ac   :  { %v1498_v18 = vadd.f32 %v1497_v17, %v1496_v15 }
 0x9ad   :  { %v1507_v25 = vpop.permute.xlu0 %1506  ;;  %v1511_v21 = vpop.permute.xlu1 %1510 }
 0x9ae   :  { %v1499_v19 = vrot.slane %v1498_v18, 2  ;;  %v1519_v27 = vmul.f32 %v1507_v25, %v2062_v12  ;;  %v1520_v28 = vmul.f32 %v1511_v21, %v2060_v10 }
 0x9b0   :  { %v1500_v30 = vadd.f32 %v1499_v19, %v1498_v18  ;;  %v1524_v29 = vsel %vm1523_vm8, %v1519_v27, 0.0  ;;  %v1525_v31 = vsel %vm1523_vm8, %v1520_v28, 0.0 }
 0x9b1   :  { %v1526_v32 = vadd.f32 %v1525_v31, %v1524_v29 }
 0x9b2   :  { %v1501_v20 = vrot.slane %v1500_v30, 1 }
 0x9b3   :  { %v1527_v33 = vrot.slane %v1526_v32, 4 }
 0x9b4   :  { %v1502_v23 = vadd.f32 %v1501_v20, %v1500_v30 }
 0x9b5   :  { %v1528_v34 = vadd.f32 %v1527_v33, %v1526_v32 }
 0x9b6   :  { %v1504_v24 = vmul.f32 0.0625, %v1502_v23 }
 0x9b7   :  { %v1529_v41 = vrot.slane %v1528_v34, 2 }
 0x9b8   :  { %1517 = vbcast.lane.b32.xlu0 %v1504_v24, 264  ;;  %1513 = vbcast.lane.b32.xlu1 %v1504_v24, 256 }
 0x9b9   :  { %v1530_v12 = vadd.f32 %v1529_v41, %v1528_v34 }
 0x9bb   :  { %v1531_v46 = vrot.slane %v1530_v12, 1 }
 0x9bd   :  { %v1532_v48 = vadd.f32 %v1531_v46, %v1530_v12 }
 0xa2a   :  { %v1518_v35 = vpop.permute.xlu0 %1517  ;;  %v1514_v36 = vpop.permute.xlu1 %1513 }
 0xa2b   :  { %v1522_v37 = vmul.f32 %v1518_v35, %v2065_v14  ;;  %v1521_v38 = vmul.f32 %v1514_v36, %v2070_v16 }
 0xa2d   :  { %v1534_v40 = vsel %vm1523_vm8, %v1522_v37, 0.0  ;;  %v1533_v39 = vsel %vm1523_vm8, %v1521_v38, 0.0 }
 0xa2e   :  { %v1535_v42 = vadd.f32 %v1534_v40, %v1533_v39 }
 0xa30   :  { %v1536_v43 = vrot.slane %v1535_v42, 4 }
 0xa32   :  { %v1537_v44 = vadd.f32 %v1536_v43, %v1535_v42 }
 0xa34   :  { %v1538_v10 = vrot.slane %v1537_v44, 2 }
 0xa36   :  { %v1539_v45 = vadd.f32 %v1538_v10, %v1537_v44 }
 0xa38   :  { %v1540_v47 = vrot.slane %v1539_v45, 1 }
 0xa3a   :  { %v1541_v49 = vadd.f32 %v1540_v47, %v1539_v45 }
 0xa3c   :  { %v1544_v50 = vsel %vm745_vm6, %v1541_v49, %v1532_v48 }
 0xa3d   :  { %1545 = vrot.lane.b32.xlu1 %v1544_v50, %s2012_s18 }
 0xaaf   :  { %v1546_v14 = vpop.permute.xlu1 %1545 }
 0xab0   :  { %1824 = vmatmul.mubr.msk.f32.vlgmr.msra.gmra.mxu1 %vm185_vm1, %v1546_v14 }
 0xb70   :  { %v1615_v16 = vpop.f32.mrf.mxu1 }
 0xb71   :  { %v1619_v52 = vadd.f32 %v1615_v16, %v2239_v26 }
 0xb72   :  { %v1825_v53 = vpop.f32.mrf.mxu1 }
 0xb73   :  { %v1627_v54 = vadd.f32 %v1687_v51, %v1619_v52 }
 0xb75   :  { %1629 = vst.msk [vmem:[#allocation8] sm:$0x3] %vm1628_vm9, %v1627_v54 }
 0xb76   :  { %1980 = shalt.err (!%p1977_p5)
}
 0xb77   :  { %1639 = dma.vmem_to_hbm [thread:$0]  %s1637_s22, 32, %s2269_s5, [#allocation4]  }
 0xb78   :  { %1993 = dma.done.wait [#allocation4], 32  }
 0xb79   :  { %1994 = vsyncadd [#allocation4], 4294967264 }
 0xb7a   :  { %1643 = vsyncpa [#allocation3], 1 }
 0xb7b   :  { %1644 = vsyncpa [#allocation6], 1 }
 0xb7c   :  { %1645 = vsyncpa [#allocation4], 1 }

</bundles_post_ra>
